<compile_context>
chip_gen: v6e
topology: v6e:2x2x1
jax: 0.10.0
libtpu: 0.0.40
codegen_flags: <defaults>
</compile_context>

<pallas_src>
import math

import jax
import jax.numpy as jnp
from jax.experimental import pallas as pl
from jax.experimental.pallas import tpu as pltpu


def _round_up(n: int, m: int) -> int:
    return ((n + m - 1) // m) * m


def _cdiv(a: int, b: int) -> int:
    return (a + b - 1) // b


# --------------------------------------------------------------------------------------
# Kernels
# --------------------------------------------------------------------------------------
def _kernel_resident(x_ref, w_ref, b_ref, o_ref):
    """out = relu(x @ W + b) + x with the whole (Dp, Dp) bf16 W resident in VMEM."""
    x = x_ref[...]                                              # (tile_b, Dp) f32
    h = jnp.dot(x.astype(jnp.bfloat16), w_ref[...],
                preferred_element_type=jnp.float32)             # MXU, f32 accumulate
    h = h + b_ref[...]
    o_ref[...] = (jnp.maximum(h, 0.0) + x).astype(o_ref.dtype)


def _kernel_ntiled(x_ref, xres_ref, w_ref, b_ref, o_ref):
    """Out-feature-tiled variant: W block is (Dp, tn); residual comes from xres_ref."""
    h = jnp.dot(x_ref[...].astype(jnp.bfloat16), w_ref[...],
                preferred_element_type=jnp.float32)             # (tile_b, tn) f32
    h = h + b_ref[...]
    o_ref[...] = (jnp.maximum(h, 0.0) + xres_ref[...]).astype(o_ref.dtype)


# --------------------------------------------------------------------------------------
# Parameter preparation (run ONCE, not per forward call)
# --------------------------------------------------------------------------------------
def init_params(key, dim):
    """PyTorch-style init: xavier_normal_ weight of shape (out, in), zero bias."""
    std = math.sqrt(2.0 / (dim + dim))
    w = std * jax.random.normal(key, (dim, dim), dtype=jnp.float32)   # (out, in)
    b = jnp.zeros((dim,), dtype=jnp.float32)
    return w, b


def prepare_params(w, b):
    """Convert PyTorch-layout (out, in) params to kernel layout, once.

    Transposes to (in, out), zero-pads features to a multiple of 128, casts the weight
    to bf16 (MXU-native, halves its HBM/VMEM footprint), keeps bias f32 as a (1, Dp) row.
    """
    d_out, d_in = w.shape
    assert d_out == d_in, "ResFCBlock requires input_dim == output_dim for the residual"
    dp = _round_up(d_in, 128)
    w_p = jnp.zeros((dp, dp), jnp.bfloat16).at[:d_in, :d_out].set(w.T.astype(jnp.bfloat16))
    b_p = jnp.zeros((1, dp), jnp.float32).at[0, :d_out].set(b.astype(jnp.float32))
    return w_p, b_p


# --------------------------------------------------------------------------------------
# Forward wrapper
# --------------------------------------------------------------------------------------
def res_fc_forward(x, w_p, b_p, *, max_tile_b: int = 512,
                   w_resident_limit_bytes: int = 8 * 1024 * 1024):
    """ResFCBlock forward: relu(x @ W^T + b) + x.

    x   : (B, D)   f32
    w_p : (Dp, Dp) bf16 from prepare_params (already transposed to (in, out) and padded)
    b_p : (1, Dp)  f32  from prepare_params
    Returns (B, D) f32.
    """
    B, D = x.shape
    Dp = w_p.shape[0]

    # Pad x features (W/b are pre-padded); padded columns are zero -> no contribution.
    if D != Dp:
        x = jnp.pad(x, ((0, 0), (0, Dp - D)))

    w_bytes = Dp * Dp * w_p.dtype.itemsize
    resident = w_bytes <= w_resident_limit_bytes

    if resident:
        tn, grid_n = Dp, 1
    else:
        tn = 256 if Dp % 256 == 0 else 128       # 256 fills the 2x256^2 MXU on v6e/v7x
        grid_n = Dp // tn

    # Batch tile: cap the full-width x tile's VMEM footprint, minimize pad waste, and
    # guarantee >= 2 parallel grid steps (v7x megacore) when B is large enough.
    tile_cap = max(8, ((8 * 1024 * 1024) // (Dp * 4)) // 8 * 8)
    max_tb = max(8, min(max_tile_b, tile_cap))
    n_b = _cdiv(B, max_tb)
    if n_b == 1 and grid_n == 1 and B >= 16:
        n_b = 2
    tile_b = _round_up(_cdiv(B, n_b), 8)
    Bp = _round_up(B, tile_b)
    grid_b = Bp // tile_b
    if Bp != B:
        x = jnp.pad(x, ((0, Bp - B), (0, 0)))

    # Explicit scoped-VMEM limit (double-buffered blocks + temporaries headroom), v7x-safe.
    x_tile = tile_b * Dp * 4
    out_tile = tile_b * tn * 4
    w_blk = Dp * tn * w_p.dtype.itemsize
    work = 2 * (x_tile + out_tile + w_blk + tn * 4)
    if not resident:
        work += 2 * tile_b * tn * 4              # residual x blocks
    vmem_limit = int(min(2 * work + (4 << 20), 64 << 20))

    cost = pl.CostEstimate(
        flops=2 * Bp * Dp * Dp,
        transcendentals=0,
        bytes_accessed=int(Bp * Dp * 4 * (3 if not resident else 2)
                           + (grid_b if not resident else 1) * w_bytes + Dp * 4))

    out_shape = jax.ShapeDtypeStruct((Bp, Dp), jnp.float32)

    if resident:
        out = pl.pallas_call(
            _kernel_resident,
            out_shape=out_shape,
            grid=(grid_b,),
            in_specs=[
                pl.BlockSpec((tile_b, Dp), lambda i: (i, 0)),   # x: batch-tiled, pipelined
                pl.BlockSpec((Dp, Dp), lambda i: (0, 0)),       # W: resident across steps
                pl.BlockSpec((1, Dp), lambda i: (0, 0)),        # b: resident
            ],
            out_specs=pl.BlockSpec((tile_b, Dp), lambda i: (i, 0)),  # lane-dense output
            compiler_params=pltpu.CompilerParams(
                dimension_semantics=("parallel",),
                vmem_limit_bytes=vmem_limit),
            cost_estimate=cost,
        )(x, w_p, b_p)
    else:
        out = pl.pallas_call(
            _kernel_ntiled,
            out_shape=out_shape,
            grid=(grid_b, grid_n),
            in_specs=[
                pl.BlockSpec((tile_b, Dp), lambda i, j: (i, 0)),  # x (matmul), resident over j
                pl.BlockSpec((tile_b, tn), lambda i, j: (i, j)),  # x (residual block)
                pl.BlockSpec((Dp, tn), lambda i, j: (0, j)),      # W column block
                pl.BlockSpec((1, tn), lambda i, j: (0, j)),       # bias block
            ],
            out_specs=pl.BlockSpec((tile_b, tn), lambda i, j: (i, j)),
            compiler_params=pltpu.CompilerParams(
                dimension_semantics=("parallel", "parallel"),
                vmem_limit_bytes=vmem_limit),
            cost_estimate=cost,
        )(x, x, w_p, b_p)

    return out[:B, :D]


# --------------------------------------------------------------------------------------
# References
# --------------------------------------------------------------------------------------
def reference_forward(x, w, b):
    """Pure-f32 reference of the PyTorch module (w is (out, in))."""
    return jnp.maximum(x @ w.T + b[None, :], 0.0) + x


def reference_forward_bf16(x, w, b):
    """Reference with bf16 matmul operands / f32 accumulation (matches kernel math)."""
    h = jnp.dot(x.astype(jnp.bfloat16), w.T.astype(jnp.bfloat16),
                preferred_element_type=jnp.float32) + b[None, :]
    return jnp.maximum(h, 0.0) + x


if __name__ == "__main__":
    key = jax.random.PRNGKey(0)
    k_x1, k_w1, k_x2, k_w2 = jax.random.split(key, 4)

    # Case 1: ResFCBlock(100, 100); B=37 / D=100 exercise batch & feature padding and the
    # resident-weight single-axis path (W fits VMEM comfortably).
    B, D = 37, 100
    x = jax.random.normal(k_x1, (B, D), dtype=jnp.float32)
    w, b = init_params(k_w1, D)
    w_p, b_p = prepare_params(w, b)
    out = jax.block_until_ready(res_fc_forward(x, w_p, b_p))
    assert out.shape == (B, D), out.shape
    assert jnp.allclose(out, reference_forward_bf16(x, w, b), atol=1e-3, rtol=1e-3), \
        "mismatch vs bf16-operand reference (case 1)"
    assert jnp.allclose(out, reference_forward(x, w, b), atol=3e-2, rtol=3e-2), \
        "mismatch vs f32 reference (case 1)"

    # Case 2: force the out-feature-tiled path (the large-D / v7x-VMEM layout) at a small
    # shape so that code path is also exercised end-to-end.
    B2, D2 = 24, 300
    x2 = jax.random.normal(k_x2, (B2, D2), dtype=jnp.float32)
    w2, b2 = init_params(k_w2, D2)
    w2_p, b2_p = prepare_params(w2, b2)
    out2 = jax.block_until_ready(
        res_fc_forward(x2, w2_p, b2_p, w_resident_limit_bytes=0))
    assert out2.shape == (B2, D2), out2.shape
    assert jnp.allclose(out2, reference_forward_bf16(x2, w2, b2), atol=1e-3, rtol=1e-3), \
        "mismatch vs bf16-operand reference (case 2)"
    assert jnp.allclose(out2, reference_forward(x2, w2, b2), atol=3e-2, rtol=3e-2), \
        "mismatch vs f32 reference (case 2)"

    print("KERNEL_OK")
</pallas_src>

<mosaic_0001>
module attributes {stable_mosaic.version = 11 : i64} {
  func.func @_kernel_resident(%arg0: i32, %arg1: memref<24x128xf32, #tpu.memory_space<vmem>>, %arg2: memref<128x128xbf16, #tpu.memory_space<vmem>>, %arg3: memref<1x128xf32, #tpu.memory_space<vmem>>, %arg4: memref<24x128xf32, #tpu.memory_space<vmem>>) attributes {dimension_semantics = [#tpu.dimension_semantics<parallel>], iteration_bounds = array<i64: 2>, scalar_prefetch = 0 : i64, scratch_operands = 0 : i64, tpu.core_type = #tpu.core_type<tc>, window_params = [{transform_indices = @transform_0, window_bounds = array<i64: 24, 128>}, {pipeline_mode = #tpu.pipeline_mode<synchronous>, transform_indices = @transform_1, window_bounds = array<i64: 128, 128>}, {pipeline_mode = #tpu.pipeline_mode<synchronous>, transform_indices = @transform_2, window_bounds = array<i64: 1, 128>}, {transform_indices = @transform_3, window_bounds = array<i64: 24, 128>}]} {
    %c0 = arith.constant 0 : index
    %c0_0 = arith.constant 0 : index
    %0 = vector.load %arg1[%c0, %c0_0] : memref<24x128xf32, #tpu.memory_space<vmem>>, vector<24x128xf32>
    %1 = arith.truncf %0 : vector<24x128xf32> to vector<24x128xbf16>
    %c0_1 = arith.constant 0 : index
    %c0_2 = arith.constant 0 : index
    %2 = vector.load %arg2[%c0_1, %c0_2] : memref<128x128xbf16, #tpu.memory_space<vmem>>, vector<128x128xbf16>
    %cst = arith.constant dense<0.000000e+00> : vector<24x128xf32>
    %3 = tpu.matmul %1, %2, %cst {dimension_numbers = #tpu.dot_dimension_numbers<[1], [0], [0], [1], [0, 0, 1, 1], [], []>} : vector<24x128xbf16>, vector<128x128xbf16>, vector<24x128xf32> -> vector<24x128xf32>
    %c0_3 = arith.constant 0 : index
    %c0_4 = arith.constant 0 : index
    %4 = vector.load %arg3[%c0_3, %c0_4] : memref<1x128xf32, #tpu.memory_space<vmem>>, vector<1x128xf32>
    %5 = vector.broadcast %4 : vector<1x128xf32> to vector<24x128xf32>
    %6 = arith.addf %3, %5 : vector<24x128xf32>
    %cst_5 = arith.constant 0.000000e+00 : f32
    %7 = vector.broadcast %cst_5 : f32 to vector<24x128xf32>
    %8 = arith.maximumf %6, %7 : vector<24x128xf32>
    %9 = arith.addf %8, %0 : vector<24x128xf32>
    %c0_6 = arith.constant 0 : index
    %c0_7 = arith.constant 0 : index
    %10 = vector.load %arg4[%c0_6, %c0_7] : memref<24x128xf32, #tpu.memory_space<vmem>>, vector<24x128xf32>
    tpu.vector_store %arg4[%c0_6, %c0_7], %9 {strides = array<i32>} : memref<24x128xf32, #tpu.memory_space<vmem>>, vector<24x128xf32>,
    return
  }
  func.func @transform_0(%arg0: i32) -> (i32, i32) {
    %c0_i32 = arith.constant 0 : i32
    %c0_i32_0 = arith.constant 0 : i32
    return %arg0, %c0_i32 : i32, i32
  }
  func.func @transform_1(%arg0: i32) -> (i32, i32) {
    %c0_i32 = arith.constant 0 : i32
    %c0_i32_0 = arith.constant 0 : i32
    %c0_i32_1 = arith.constant 0 : i32
    return %c0_i32, %c0_i32_0 : i32, i32
  }
  func.func @transform_2(%arg0: i32) -> (i32, i32) {
    %c0_i32 = arith.constant 0 : i32
    %c0_i32_0 = arith.constant 0 : i32
    %c0_i32_1 = arith.constant 0 : i32
    return %c0_i32, %c0_i32_0 : i32, i32
  }
  func.func @transform_3(%arg0: i32) -> (i32, i32) {
    %c0_i32 = arith.constant 0 : i32
    %c0_i32_0 = arith.constant 0 : i32
    return %arg0, %c0_i32 : i32, i32
  }
}

</mosaic_0001>

<bundles_post_ra>
// kernel: tpu_custom_call.1
= control target key start
LH: loop header
LB: loop body
LE: loop exit
PB: predicated region body
PF: predicated region fallthrough
CT: control target
= control target key end

     0   :  { %8 = vsyncpa [#allocation3], 0  ;;  %s903_s0 = inlined_call_operand.hbm [shape: f32[48,128], index: 0, kind: input, shape index: {}]   ;;  %s904_s1 = inlined_call_operand.hbm [shape: bf16[128,128], index: 1, kind: input, shape index: {}]   ;;  %s905_s2 = inlined_call_operand.vmem [shape: f32[1,128], index: 2, kind: input, shape index: {}]   ;;  %s906_s3 = inlined_call_operand.hbm [shape: f32[48,128], index: 3, kind: output, shape index: {}]  }
   0x1   :  { %10 = vsyncpa [#allocation3 + $0x1], 0 }
   0x2   :  { %11 = vsyncpa [#allocation6], 0 }
   0x3   :  { %12 = vsyncpa [#allocation4], 0 }
   0x4   :  { %14 = vsyncpa [#allocation4 + $0x1], 0  ;;  %s714_s12 = smov 0   ;;  %s716_s13 = smov 0  }
   0x5   :  { %s718_s14 = smov 0   ;;  %s720_s15 = smov 0  }
   0x6 LB: > { %s735_s16 = sadd.s32 4294967295, %s683_s15   ;;  %s437_s17 = sadd.s32 4294967294, %s683_s15   ;;  %s683_s15 = sphi %s720_s15, %s928_s15   ;;  %s679_s14 = sphi %s718_s14, %s927_s14   ;;  %s675_s13 = sphi %s716_s13, %s926_s13   ;;  %s671_s12 = sphi %s714_s12, %s925_s12  }
   0x7   : > { %p40_p0 = scmp.ne.s32.totalorder %s675_s13, %s671_s12  ;;  %p907_p1 = scmp.eq.s32.totalorder %s735_s16, 0 }
   0x8   : > { %p112_p3 = scmp.eq.s32.totalorder %s437_s17, 1  ;;  %p438_p5 = scmp.ge.s32.totalorder %s683_s15, 1 }
   0x9   : > { %p744_p4 = por %p907_p1, %p40_p0  ;;  %p119_p7 = scmp.lt.s32.totalorder %s683_s15, 3 }
   0xa   : > { %p749_p6 = por %p112_p3, %p40_p0  ;;  %s685_s21 = smov [#allocation5]  }
   0xb   : > { %s911_s18 = scalar_select %p744_p4, 1, 0 }
   0xc   : > { %s912_s19 = scalar_select %p749_p6, 1, 0 }
   0xd   : > { %p754_p8 = pnand %p438_p5, %p119_p7  ;;  %s131_s22 = sshll.u32 %s685_s21, 4  ;;  %s132_s22 = int_to_ptr.vmem [resolvable:$true] %s131_s22 }
   0xe   : > { %s768_s24 = sadd.s32 1, %s683_s15   ;;  %s27_s25 = sadd.s32 1, %s679_s14 }
   0xf   : > { %s913_s20 = scalar_select %p754_p8, 1, 0 }
  0x10   : > { %p498_p9 = pneg %p754_p8  ;;  %s24_s26 = ssub.s32 %s683_s15, %s768_s24 }
  0x11   : > { %s572_s27 = scalar_lea.vmem %s132_s22, 1024  ;;  %p580_p5 = scmp.lt.s32.totalorder %s132_s22, %s132_s22 }
  0x12   : > { %p763_p11 = pnand %p498_p9, %p907_p1  ;;  %p573_p13 = scmp.ne.s32.totalorder %s132_s22, %s572_s27 }
  0x13   : > { %p581_p7 = scmp.lt.s32.totalorder %s572_s27, %s572_s27 }
  0x14   : > { %p563_p12 = pneg %p763_p11 }
  0x15   : > { %p582_p10 = por %p581_p7, %p580_p5 }
  0x16   : > { %p575_p0 = pnand %p573_p13, %p563_p12 }
  0x18   : > { %p576_p3 = pneg %p575_p0 }
  0x1a   : > { %p583_p2 = pnand %p582_p10, %p576_p3 }
  0x1c   : > { %586 = shalt.err (!%p583_p2)
}
  0x1d   : > { %s686_s28 = smov 64   ;;  %s687_s29 = smov 4  }
  0x1e   : > { %501 = dma.hbm_to_vmem [thread:$0]  (!%p763_p11), %s904_s1, 1024, %s132_s22, [#allocation6], %s686_s28, %s686_s28, %s687_s29  }
  0x1f   : > { %p25_p9 = scmp.eq.s32.totalorder %s24_s26, 0  ;;  %p34_p12 = scmp.ne.s32.totalorder %s679_s14, %s675_s13 }
  0x20   : > { %p35_p10 = scmp.eq.s32.totalorder %s683_s15, 0  ;;  %p511_p2 = scmp.lt.s32.totalorder %s683_s15, 2 }
  0x21   : > { %s785_s5 = scalar_select %p25_p9, %s679_s14, %s27_s25  }
  0x22   : > { %p36_p13 = por %p35_p10, %p34_p12  ;;  %p915_p0 = scmp.eq.s32.totalorder %s735_s16, 1 }
  0x23   : > { %s148_s7 = sand.u32 1, %s679_s14   ;;  %s456_s8 = smul.u32 384, %s683_s15 }
  0x24   : > { %p789_p3 = por %p915_p0, %p34_p12  ;;  %s488_s9 = smul.u32 24, %s148_s7 }
  0x25   : > { %s798_s17 = scalar_lea.hbm %s903_s0, %s456_s8  ;;  %p800_p11 = pnand %p511_p2, %p36_p13 }
  0x26   : > { %s916_s6 = scalar_select %p789_p3, 1, 0 }
  0x27   : > { %s152_s22 = scalar_lea.vmem [#allocation2], %s488_s9  ;;  %s806_s25 = scalar_lea.sflag [#allocation3], %s148_s7 }
  0x28   : > { %s159_s23 = sshll.u32 %s152_s22, 4  ;;  %s587_s26 = scalar_lea.hbm %s798_s17, 384  ;;  %s804_s23 = int_to_ptr.vmem [resolvable:$true] %s159_s23 }
  0x29   : > { %p588_p5 = scmp.ne.s32.totalorder %s798_s17, %s587_s26  ;;  %p589_p7 = pneg %p800_p11 }
  0x2a   : > { %s592_s29 = scalar_lea.hbm %s903_s0, 768  ;;  %p593_p10 = scmp.lt.s32.totalorder %s798_s17, %s903_s0 }
  0x2b   : > { %p590_p9 = pnand %p589_p7, %p588_p5  ;;  %p594_p2 = scmp.lt.s32.totalorder %s592_s29, %s587_s26 }
  0x2d   : > { %p591_p12 = pneg %p590_p9  ;;  %p595_p13 = por %p594_p2, %p593_p10 }
  0x2f   : > { %p596_p0 = pnand %p595_p13, %p591_p12 }
  0x31   : > { %599 = shalt.err (!%p596_p0)
}
  0x32   : > { %s600_s7 = scalar_lea.vmem %s804_s23, 384  ;;  %s688_s8 = smov [#allocation2]  }
  0x33   : > { %p601_p1 = scmp.ne.s32.totalorder %s804_s23, %s600_s7  ;;  %s605_s9 = sshll.u32 %s688_s8, 4  ;;  %s606_s9 = int_to_ptr.vmem [resolvable:$false] %s605_s9 }
  0x34   : > { %s607_s10 = scalar_lea.vmem %s606_s9, 768  ;;  %p608_p9 = scmp.lt.s32.totalorder %s804_s23, %s606_s9 }
  0x35   : > { %p603_p6 = pnand %p601_p1, %p589_p7  ;;  %p609_p3 = scmp.lt.s32.totalorder %s607_s10, %s600_s7 }
  0x37   : > { %p604_p5 = pneg %p603_p6  ;;  %p610_p4 = por %p609_p3, %p608_p9 }
  0x39   : > { %p611_p8 = pnand %p610_p4, %p604_p5 }
  0x3b   : > { %614 = shalt.err (!%p611_p8)
}
  0x3c   : > { %s689_s11 = smov 128   ;;  %s690_s22 = smov 8  }
  0x3d   : > { %505 = dma.hbm_to_vmem [thread:$0]  (!%p800_p11), %s798_s17, 384, %s804_s23, %s806_s25, %s689_s11, %s689_s11, %s690_s22  }
  0x3e   : > { %p918_p1 = scmp.ne.s32.totalorder %s913_s20, 0 }
  0x3f   : > { %s830_s26 = sand.u32 (!%p918_p1), 1, %s675_s13   ;;  %p919_p4 = scmp.ne.s32.totalorder (!%p918_p1), %s911_s18, 0 }
  0x40   : > { %171 = sbr.rel (%p918_p1) target bundleno = 325 (0x145), region = 32  ;;  %s174_s28 = scalar_lea.sflag (!%p918_p1), [#allocation3], %s830_s26 }
  0x41   : > { %s489_s27 = smul.u32 (!%p918_p1), 24, %s830_s26 }
  0x43   : > { %s836_s29 = scalar_lea.vmem (!%p918_p1), [#allocation2], %s489_s27 }
  0x45   : > { %658 = dma.done.wait (%p919_p4), %s174_s28, 384  }
  0x46   : > { %660 = vsyncadd (%p919_p4), %s174_s28, 4294966912  ;;  %p920_p6 = scmp.eq.s32.totalorder %s735_s16, 0 }
  0x48   : > { %662 = dma.done.wait (%p920_p6), [#allocation6], 1024   ;;  %p921_p8 = pmov %p920_p6 }
  0x49   : > { %v553_v0 = vld [vmem:[#allocation5 + $0x38] sm:$0xff]   ;;  %v554_v1 = vld [vmem:[#allocation5 + $0x30] sm:$0xff]   ;;  %v555_v2 = vld [vmem:[#allocation5 + $0x28] sm:$0xff]   ;;  %s203_s17 = scalar_lea.vmem [#allocation7], %s489_s27  ;;  %s457_s23 = smul.u32 384, %s735_s16 }
  0x4a   : > { %664 = vsyncadd (%p921_p8), [#allocation6], 4294966272  ;;  %468 = vmatprep.subr.bf16.mxu0 %v553_v0  ;;  %v556_v3 = vld [vmem:[#allocation5 + $0x20] sm:$0xff]   ;;  %v207_v4 = vld [vmem:[%s836_s29] sm:$0xff]  ;;  %s354_s21 = sshll.u32 %s203_s17, 4  ;;  %s341_s7 = scalar_lea.sflag [#allocation4], %s830_s26  ;;  %s855_s21 = int_to_ptr.vmem [resolvable:$true] %s354_s21 }
  0x4b   : > { %469 = vmatpush3.bf16.msra.mxu0 %v553_v0  ;;  %v208_v5 = vld [vmem:[%s836_s29 + $0x8] sm:$0xff]  ;;  %v559_v9 = vld [vmem:[#allocation5 + $0x8] sm:$0xff]   ;;  %v560_v10 = vld [vmem:[#allocation5] sm:$0xff]   ;;  %s860_s4 = scalar_lea.hbm %s906_s3, %s457_s23  ;;  %s615_s8 = scalar_lea.vmem %s855_s21, 384 }
  0x4c   : > { %470 = vmatprep.subr.bf16.mxu0 %v554_v1  ;;  %v210_v6 = vpack.c.bf16 %v208_v5, %v207_v4  ;;  %v557_v7 = vld [vmem:[#allocation5 + $0x18] sm:$0xff]   ;;  %v558_v8 = vld [vmem:[#allocation5 + $0x10] sm:$0xff]   ;;  %p616_p3 = scmp.ne.s32.totalorder %s855_s21, %s615_s8  ;;  %p922_p11 = scmp.ne.s32.totalorder %s916_s6, 0 }
  0x4d   : > { %v209_v11 = vld [vmem:[%s836_s29 + $0x10] sm:$0xff]  ;;  %v444_v13 = vld [vmem:[%s905_s2] ss:$0 sm:$0xff]  ;;  %s691_s16 = smov [#allocation7]  }
  0x4e   : > { %484 = vmatprep.mubr.bf16.mxu0 %v210_v6  ;;  %v211_v12 = vpack.c.bf16 %v209_v11, %v209_v11  ;;  %p617_p7 = pnand %p616_p3, %p922_p11  ;;  %s619_s9 = sshll.u32 %s691_s16, 4  ;;  %s620_s9 = int_to_ptr.vmem [resolvable:$false] %s619_s9 }
  0x4f   : > { %471 = vmatpush3.bf16.msra.mxu0 %v554_v1  ;;  %s621_s10 = scalar_lea.vmem %s620_s9, 768  ;;  %p622_p10 = scmp.lt.s32.totalorder %s855_s21, %s620_s9 }
  0x50   : > { %472 = vmatprep.subr.bf16.mxu0 %v555_v2  ;;  %p618_p12 = pneg %p617_p7  ;;  %p623_p2 = scmp.lt.s32.totalorder %s621_s10, %s615_s8 }
  0x52   : > { %p624_p13 = por %p623_p2, %p622_p10 }
  0x53   : > { %473 = vmatpush3.bf16.msra.mxu0 %v555_v2 }
  0x54   : > { %474 = vmatprep.subr.bf16.mxu0 %v556_v3  ;;  %p625_p0 = pnand %p624_p13, %p618_p12 }
  0x57   : > { %475 = vmatpush3.bf16.msra.mxu0 %v556_v3 }
  0x58   : > { %476 = vmatprep.subr.bf16.mxu0 %v557_v7 }
  0x5b   : > { %477 = vmatpush3.bf16.msra.mxu0 %v557_v7 }
  0x5c   : > { %478 = vmatprep.subr.bf16.mxu0 %v558_v8 }
  0x5f   : > { %479 = vmatpush3.bf16.msra.mxu0 %v558_v8 }
  0x60   : > { %480 = vmatprep.subr.bf16.mxu0 %v559_v9 }
  0x63   : > { %481 = vmatpush3.bf16.msra.mxu0 %v559_v9 }
  0x64   : > { %482 = vmatprep.subr.bf16.mxu0 %v560_v10 }
  0x67   : > { %483 = vmatpush3.bf16.msra.mxu0 %v560_v10 }
  0x6a   : > { %485 = vmatmul.mubr.bf16.vlgmr.msra.gmra.mxu0 %v211_v12 }
 0x12a   : > { %v486_v14 = vpop.f32.mrf.mxu0 }
 0x12b   : > { %v326_v15 = vadd.f32 %v486_v14, %v444_v13 }
 0x12c   : > { %v317_v16 = vpop.f32.mrf.mxu0 }
 0x12d   : > { %v333_v17 = vmax.f32 %v326_v15, 0.0  ;;  %v318_v18 = vadd.f32 %v444_v13, %v317_v16 }
 0x12e   : > { %v487_v19 = vpop.f32.mrf.mxu0 }
 0x12f   : > { %v336_v20 = vadd.f32 %v333_v17, %v209_v11  ;;  %v331_v21 = vmax.f32 %v318_v18, 0.0 }
 0x130   : > { %v320_v22 = vpop.f32.mrf.mxu0 }
 0x131   : > { %339 = vst [vmem:[%s203_s17 + $0x10] sm:$0xff] %v336_v20  ;;  %v334_v23 = vadd.f32 %v331_v21, %v207_v4  ;;  %v321_v24 = vadd.f32 %v444_v13, %v320_v22 }
 0x133   : > { %337 = vst [vmem:[%s203_s17] sm:$0xff] %v334_v23  ;;  %v332_v25 = vmax.f32 %v321_v24, 0.0 }
 0x135   : > { %v335_v26 = vadd.f32 %v332_v25, %v208_v5 }
 0x137   : > { %338 = vst [vmem:[%s203_s17 + $0x8] sm:$0xff] %v335_v26 }
 0x138   : > { %628 = shalt.err (!%p625_p0)
}
 0x139   : > { %s629_s11 = scalar_lea.hbm %s860_s4, 384  ;;  %s633_s28 = scalar_lea.hbm %s906_s3, 768 }
 0x13a   : > { %p630_p5 = scmp.ne.s32.totalorder %s860_s4, %s629_s11  ;;  %p634_p4 = scmp.lt.s32.totalorder %s860_s4, %s906_s3 }
 0x13b   : > { %p635_p6 = scmp.lt.s32.totalorder %s633_s28, %s629_s11 }
 0x13c   : > { %p631_p9 = pnand %p630_p5, %p922_p11 }
 0x13d   : > { %p636_p8 = por %p635_p6, %p634_p4 }
 0x13e   : > { %p632_p1 = pneg %p631_p9 }
 0x140   : > { %p637_p3 = pnand %p636_p8, %p632_p1 }
 0x142   : > { %640 = shalt.err (!%p637_p3)
}
 0x143   : > { %s692_s20 = smov 128   ;;  %s693_s17 = smov 8  }
 0x144   : > { %496 = dma.vmem_to_hbm [thread:$0]  (%p922_p11), %s855_s21, 384, %s860_s4, %s341_s7, %s692_s20, %s692_s20, %s693_s17  }
 0x145 PF: > { %s369_s23 = sand.u32 1, %s671_s12   ;;  %p923_p7 = scmp.ne.s32.totalorder %s912_s19, 0 }
 0x146   : > { %p924_p12 = scmp.ge.s32.totalorder %s683_s15, 2  ;;  %s370_s25 = scalar_lea.sflag [#allocation4], %s369_s23 }
 0x148   : > { %p507_p10 = pnand %p924_p12, %p923_p7 }
 0x14a   : > { %p508_p2 = pneg %p507_p10 }
 0x14c   : > { %666 = dma.done.wait (%p508_p2), %s370_s25, 384  }
 0x14d   : > { %668 = vsyncadd (%p508_p2), %s370_s25, 4294966912  ;;  %p17_p13 = scmp.ge.s32.totalorder %s768_s24, 4   ;;  %s925_s12 = smov %s675_s13 }
 0x14e   : > { %s926_s13 = smov %s679_s14  ;;  %s927_s14 = smov %s785_s5 }
 0x14f   : > { %s928_s15 = smov %s768_s24  ;;  %19 = sbr.rel (!%p17_p13) target bundleno = 6 (0x6), region = 81 }
 0x154   :  { %375 = vsyncpa [#allocation3], 1 }
 0x155   :  { %377 = vsyncpa [#allocation3 + $0x1], 1 }
 0x156   :  { %378 = vsyncpa [#allocation6], 1 }
 0x157   :  { %379 = vsyncpa [#allocation4], 1 }
 0x158   :  { %381 = vsyncpa [#allocation4 + $0x1], 1 }

</bundles_post_ra>
